<compile_context>
chip_gen: v7x
topology: tpu7x:2x2x1
jax: 0.10.0
libtpu: 0.0.40
codegen_flags: <defaults>
</compile_context>

<pallas_src>
import jax
import jax.numpy as jnp
import numpy as np
from jax.experimental import pallas as pl
from jax.experimental.pallas import tpu as pltpu

_LANE = 128                      # f32 lane width of a vreg
_NEG_FLOOR = -1e30               # finite stand-in for -inf in the stabilizer
_DEFAULT_BLOCK_BYTES = 6 << 20   # ~6 MiB of cond per grid step (v5e/v6e/v7x safe)


# ---------------------------------------------------------------------------
# Tiling heuristics
# ---------------------------------------------------------------------------

def _choose_b_tile(b_pad, q, max_block_bytes, min_block_bytes=1 << 20):
    """Pick a lane-aligned batch tile that divides the padded batch.

    Preference order: even grids of >= 4 steps with blocks >= ~1 MiB (v7x
    megacore + pipelining), then >= 2 steps, then the biggest block that fits
    the byte budget (amortises the ~0.35 us per-step overhead).
    """
    nb = b_pad // _LANE
    col_bytes = q * q * 4 * _LANE            # cond bytes per 128-lane group
    cap = max(1, max_block_bytes // col_bytes)
    best_k, best_key = 1, None
    for k in range(1, nb + 1):
        if nb % k or k > cap:
            continue
        steps = nb // k
        block_bytes = k * col_bytes
        key = (steps >= 4 and steps % 2 == 0 and block_bytes >= min_block_bytes,
               steps >= 2,
               block_bytes)
        if best_key is None or key > best_key:
            best_key, best_k = key, k
    return best_k * _LANE


def _choose_kq_tile(q, b_tile, max_block_bytes):
    """Tile the conditioning axis when even a 128-lane block blows the budget."""
    if q * q * 4 * b_tile <= max_block_bytes:
        return q
    best = None
    for t in range(8, q, 8):                 # must stay a multiple of 8 (sublanes)
        if q % t == 0 and t * q * 4 * b_tile <= max_block_bytes:
            best = t
    return best if best is not None else q


def _choose_chunks(q, b_tile, slab_bytes=32 << 10):
    """Register-slab sizes: keep (row_chunk, lane_chunk) around ~8 vregs."""
    row_chunk = min(q, 16)
    lane_chunk = _LANE
    for c in (2048, 1024, 512, 384, 256, 128):
        if c <= b_tile and b_tile % c == 0 and row_chunk * c * 4 <= slab_bytes:
            lane_chunk = c
            break
    return row_chunk, lane_chunk


def _vmem_limit(need_bytes):
    """Scoped-VMEM request: double-buffered blocks + scratch + headroom."""
    return int(min(max(need_bytes + (2 << 20), 32 << 20), 120 << 20))


# ---------------------------------------------------------------------------
# Kernel bodies
# ---------------------------------------------------------------------------

def _online_logsumexp_block(cond_ref, old_ref, j_count, r0, rr, c0, lane_chunk,
                            m0, s0, unroll):
    """Streaming online logsumexp over the conditioning axis for one slab.

    cond_ref: (J, Q, bt) ref (J = conditioning states in this block)
    old_ref:  (J, bt) ref (previous forward, conditioning state on rows)
    Processes target rows [r0, r0+rr) and lanes [c0, c0+lane_chunk).
    """
    cols = slice(c0, c0 + lane_chunk)

    def body(j, carry):
        m, s = carry
        old_row = old_ref[pl.ds(j, 1), cols].astype(jnp.float32)       # (1, C)
        x = cond_ref[j, r0:r0 + rr, cols].astype(jnp.float32) + old_row
        m_new = jnp.maximum(m, x)
        m_sub = jnp.maximum(m_new, _NEG_FLOOR)   # keeps exp finite if all -inf
        s = s * jnp.exp(m - m_sub) + jnp.exp(x - m_sub)
        return m_new, s

    return jax.lax.fori_loop(0, j_count, body, (m0, s0), unroll=unroll)


def _make_step_kernel(q, kq_tile, b_tile, lane_chunk, row_chunk, num_kq):
    """One TotalProbabilityCell step; batch on lanes, cond state reduced online."""
    unroll = kq_tile <= 32

    if num_kq == 1:
        # Whole conditioning axis fits one block: no scratch accumulators.
        def kernel(cond_ref, old_ref, fwd_ref):
            for c0 in range(0, b_tile, lane_chunk):
                for r0 in range(0, q, row_chunk):
                    rr = min(row_chunk, q - r0)
                    m0 = jnp.full((rr, lane_chunk), -jnp.inf, jnp.float32)
                    s0 = jnp.zeros((rr, lane_chunk), jnp.float32)
                    m, s = _online_logsumexp_block(
                        cond_ref, old_ref, kq_tile, r0, rr, c0, lane_chunk,
                        m0, s0, unroll)
                    fwd_ref[r0:r0 + rr, c0:c0 + lane_chunk] = (
                        jnp.log(s) + jnp.maximum(m, _NEG_FLOOR))
        return kernel

    # Large Q: conditioning axis tiled into an "arbitrary" grid dim; the online
    # (m, s) accumulators live in VMEM scratch across the kq steps.
    def kernel(cond_ref, old_ref, fwd_ref, m_ref, s_ref):
        kq = pl.program_id(1)

        @pl.when(kq == 0)
        def _init():
            m_ref[...] = jnp.full(m_ref.shape, -jnp.inf, m_ref.dtype)
            s_ref[...] = jnp.zeros(s_ref.shape, s_ref.dtype)

        is_last = kq == num_kq - 1
        for c0 in range(0, b_tile, lane_chunk):
            for r0 in range(0, q, row_chunk):
                rr = min(row_chunk, q - r0)
                m0 = m_ref[r0:r0 + rr, c0:c0 + lane_chunk]
                s0 = s_ref[r0:r0 + rr, c0:c0 + lane_chunk]
                m, s = _online_logsumexp_block(
                    cond_ref, old_ref, kq_tile, r0, rr, c0, lane_chunk,
                    m0, s0, unroll)
                m_ref[r0:r0 + rr, c0:c0 + lane_chunk] = m
                s_ref[r0:r0 + rr, c0:c0 + lane_chunk] = s

                @pl.when(is_last)
                def _finalize():
                    fwd_ref[r0:r0 + rr, c0:c0 + lane_chunk] = (
                        jnp.log(s) + jnp.maximum(m, _NEG_FLOOR))

    return kernel


def _make_scan_kernel(q, b_tile, lane_chunk, row_chunk):
    """Fused recurrence over T chunks; forward state held in VMEM scratch."""
    unroll = q <= 32

    def kernel(cond_ref, init_ref, out_ref, state_ref):
        t = pl.program_id(1)

        @pl.when(t == 0)
        def _init():
            state_ref[...] = init_ref[...].astype(state_ref.dtype)

        for c0 in range(0, b_tile, lane_chunk):
            for r0 in range(0, q, row_chunk):
                rr = min(row_chunk, q - r0)
                m0 = jnp.full((rr, lane_chunk), -jnp.inf, jnp.float32)
                s0 = jnp.zeros((rr, lane_chunk), jnp.float32)
                m, s = _online_logsumexp_block(
                    cond_ref, state_ref, q, r0, rr, c0, lane_chunk, m0, s0,
                    unroll)
                out_ref[r0:r0 + rr, c0:c0 + lane_chunk] = (
                    jnp.log(s) + jnp.maximum(m, _NEG_FLOOR))
        # All reads of the old state are done; carry the new forward to t + 1.
        state_ref[...] = out_ref[...]

    return kernel


# ---------------------------------------------------------------------------
# Wrappers
# ---------------------------------------------------------------------------

def total_probability_step_qqb(cond_qqb, old_qb, *, b_tile=None,
                               max_block_bytes=_DEFAULT_BLOCK_BYTES):
    """One step in the lane-dense layout.

    cond_qqb: (Q_cond, Q_target, B) log-probs (float32 or bfloat16).
    old_qb:   (Q, B) previous forward log-probs.
    Returns:  (Q, B) float32 new forward log-probs.
    """
    q, q2, b = cond_qqb.shape
    assert q == q2, "conditional_forward must be (Q, Q, B)"
    assert old_qb.shape == (q, b)
    if cond_qqb.dtype not in (jnp.float32, jnp.bfloat16):
        cond_qqb = cond_qqb.astype(jnp.float32)
    old_qb = old_qb.astype(jnp.float32)

    # Lane-align the batch.  NOTE: jnp.pad re-streams the whole cond tensor;
    # hot paths should supply a batch that is already a multiple of 128.
    b_pad = -(-b // _LANE) * _LANE
    if b_pad != b:
        cond_qqb = jnp.pad(cond_qqb, ((0, 0), (0, 0), (0, b_pad - b)))
        old_qb = jnp.pad(old_qb, ((0, 0), (0, b_pad - b)))

    if b_tile is None:
        b_tile = _choose_b_tile(b_pad, q, max_block_bytes)
    assert b_tile % _LANE == 0 and b_pad % b_tile == 0
    kq_tile = _choose_kq_tile(q, b_tile, max_block_bytes)
    row_chunk, lane_chunk = _choose_chunks(q, b_tile)
    num_b = b_pad // b_tile
    num_kq = q // kq_tile

    itemsize = cond_qqb.dtype.itemsize
    cond_block = kq_tile * q * b_tile * itemsize
    old_block = kq_tile * b_tile * 4
    out_block = q * b_tile * 4
    scratch = (2 * q * b_tile * 4) if num_kq > 1 else 0
    vmem_limit = _vmem_limit(2 * (cond_block + old_block + out_block) + scratch)

    cost = pl.CostEstimate(
        flops=7 * q * q * b_pad,
        transcendentals=2 * q * q * b_pad,
        bytes_accessed=q * q * b_pad * itemsize + 2 * q * b_pad * 4,
    )

    kernel = _make_step_kernel(q, kq_tile, b_tile, lane_chunk, row_chunk, num_kq)

    if num_kq == 1:
        grid = (num_b,)
        in_specs = [
            pl.BlockSpec((q, q, b_tile), lambda i: (0, 0, i)),
            pl.BlockSpec((q, b_tile), lambda i: (0, i)),
        ]
        out_specs = pl.BlockSpec((q, b_tile), lambda i: (0, i))
        scratch_shapes = []
        dims = ("parallel",)
    else:
        grid = (num_b, num_kq)
        in_specs = [
            pl.BlockSpec((kq_tile, q, b_tile), lambda i, k: (k, 0, i)),
            pl.BlockSpec((kq_tile, b_tile), lambda i, k: (k, i)),
        ]
        out_specs = pl.BlockSpec((q, b_tile), lambda i, k: (0, i))
        scratch_shapes = [pltpu.VMEM((q, b_tile), jnp.float32),
                          pltpu.VMEM((q, b_tile), jnp.float32)]
        dims = ("parallel", "arbitrary")

    fwd = pl.pallas_call(
        kernel,
        out_shape=jax.ShapeDtypeStruct((q, b_pad), jnp.float32),
        grid=grid,
        in_specs=in_specs,
        out_specs=out_specs,
        scratch_shapes=scratch_shapes,
        compiler_params=pltpu.CompilerParams(
            dimension_semantics=dims, vmem_limit_bytes=vmem_limit),
        cost_estimate=cost,
    )(cond_qqb, old_qb)
    return fwd if b_pad == b else fwd[:, :b]


def total_probability_scan_qqb(cond_seq_qqb, init_forward_qb, *, b_tile=None,
                               max_block_bytes=_DEFAULT_BLOCK_BYTES):
    """Run the full recurrence over T chunks in a single pallas_call.

    cond_seq_qqb:    (T, Q_cond, Q_target, B) log-probs.
    init_forward_qb: (Q, B) initial forward log-probs.
    Returns:         (T, Q, B) float32 forward log-probs per step.
    """
    t_steps, q, q2, b = cond_seq_qqb.shape
    assert q == q2
    assert init_forward_qb.shape == (q, b)
    if cond_seq_qqb.dtype not in (jnp.float32, jnp.bfloat16):
        cond_seq_qqb = cond_seq_qqb.astype(jnp.float32)
    init_forward_qb = init_forward_qb.astype(jnp.float32)

    b_pad = -(-b // _LANE) * _LANE
    if b_pad != b:
        cond_seq_qqb = jnp.pad(cond_seq_qqb,
                               ((0, 0), (0, 0), (0, 0), (0, b_pad - b)))
        init_forward_qb = jnp.pad(init_forward_qb, ((0, 0), (0, b_pad - b)))

    if b_tile is None:
        b_tile = _choose_b_tile(b_pad, q, max_block_bytes)
    assert b_tile % _LANE == 0 and b_pad % b_tile == 0
    # TODO(synk): very large Q (cond block > VMEM even at b_tile=128) needs the
    # same conditioning-axis grid tiling as the single-step kernel.
    row_chunk, lane_chunk = _choose_chunks(q, b_tile)
    num_b = b_pad // b_tile

    itemsize = cond_seq_qqb.dtype.itemsize
    cond_block = q * q * b_tile * itemsize
    state_block = q * b_tile * 4
    vmem_limit = _vmem_limit(2 * (cond_block + 2 * state_block) + state_block)

    cost = pl.CostEstimate(
        flops=7 * t_steps * q * q * b_pad,
        transcendentals=2 * t_steps * q * q * b_pad,
        bytes_accessed=t_steps * q * q * b_pad * itemsize
        + (t_steps + 2) * q * b_pad * 4,
    )

    fwd_seq = pl.pallas_call(
        _make_scan_kernel(q, b_tile, lane_chunk, row_chunk),
        out_shape=jax.ShapeDtypeStruct((t_steps, q, b_pad), jnp.float32),
        grid=(num_b, t_steps),
        in_specs=[
            pl.BlockSpec((None, q, q, b_tile), lambda i, t: (t, 0, 0, i)),
            pl.BlockSpec((q, b_tile), lambda i, t: (0, i)),
        ],
        out_specs=pl.BlockSpec((None, q, b_tile), lambda i, t: (t, 0, i)),
        scratch_shapes=[pltpu.VMEM((q, b_tile), jnp.float32)],
        compiler_params=pltpu.CompilerParams(
            dimension_semantics=("parallel", "arbitrary"),
            vmem_limit_bytes=vmem_limit),
        cost_estimate=cost,
    )(cond_seq_qqb, init_forward_qb)
    return fwd_seq if b_pad == b else fwd_seq[:, :, :b]


def total_probability_step(conditional_forward, old_forward, *, q,
                           b_tile=None, max_block_bytes=_DEFAULT_BLOCK_BYTES):
    """Module-compatible API: (B, Q*Q), (B, Q) -> ((B, Q) forward, (B,) loglik).

    TODO(synk): the producer should emit conditional_forward directly in the
    lane-dense (Q_cond, Q_target, B) layout and call total_probability_step_qqb
    (or total_probability_scan_qqb); the transpose below re-streams the whole
    tensor through HBM and exists only to keep the original (B, Q*Q) interface.
    """
    b = conditional_forward.shape[0]
    cond_qqb = jnp.transpose(conditional_forward.reshape(b, q, q), (1, 2, 0))
    old_qb = jnp.transpose(old_forward, (1, 0))
    fwd_qb = total_probability_step_qqb(cond_qqb, old_qb, b_tile=b_tile,
                                        max_block_bytes=max_block_bytes)
    fwd = jnp.transpose(fwd_qb, (1, 0))                   # (B, Q), tiny
    loglik = jax.nn.logsumexp(fwd, axis=-1)               # tiny, stays in XLA
    return fwd, loglik


class TotalProbabilityCellJAX:
    """JAX/Pallas port of TotalProbabilityCell with a synthetic HMM cell config."""

    def __init__(self, max_num_states, num_models, reverse=False):
        self.max_num_states = max_num_states
        self.num_models = num_models
        self.reverse = reverse

    def make_initial_distribution(self):
        q = self.max_num_states
        return jnp.full((1, self.num_models, q), 1.0 / q, dtype=jnp.float32)

    def get_initial_state(self, batch_size, dtype=jnp.float32):
        if self.reverse:
            return (jnp.zeros((batch_size, self.max_num_states), dtype=dtype),
                    jnp.zeros((batch_size,), dtype=dtype))
        init_dist = self.make_initial_distribution()                  # (1, k, q)
        init_dist = jnp.tile(init_dist, (batch_size // self.num_models, 1, 1))
        init_dist = jnp.transpose(init_dist, (1, 0, 2))
        init_dist = init_dist.reshape(-1, self.max_num_states)        # (B, q)
        loglik = jnp.zeros((batch_size,), dtype=dtype)
        return (jnp.log(init_dist).astype(dtype), loglik)

    def forward(self, conditional_forward, states):
        old_forward, _loglik = states
        fwd, ll = total_probability_step(conditional_forward, old_forward,
                                         q=self.max_num_states)
        return fwd, (fwd, ll)


# ---------------------------------------------------------------------------
# Pure-JAX references and demo
# ---------------------------------------------------------------------------

def _reference_forward(conditional_forward, old_forward, q):
    b = conditional_forward.shape[0]
    cond = conditional_forward.reshape(b, q, q)
    x = old_forward[:, :, None] + cond
    fwd = jax.nn.logsumexp(x, axis=-2)
    ll = jax.nn.logsumexp(fwd, axis=-1)
    return fwd, ll


def _reference_scan(cond_seq_qqb, init_forward_bq):
    def step(old_bq, cond_t):
        cond_bqq = jnp.transpose(cond_t, (2, 0, 1))
        fwd = jax.nn.logsumexp(old_bq[:, :, None] + cond_bqq, axis=-2)
        return fwd, fwd
    _, fwds = jax.lax.scan(step, init_forward_bq, cond_seq_qqb)
    return fwds                                            # (T, B, Q)


if __name__ == "__main__":
    Q = 16            # max_num_states
    NUM_MODELS = 2
    B = 256           # two 128-lane groups -> a 2-step "parallel" grid
    T = 4             # chunks for the fused-scan variant

    cell = TotalProbabilityCellJAX(max_num_states=Q, num_models=NUM_MODELS)
    key = jax.random.PRNGKey(0)
    k_cond, k_seq = jax.random.split(key)

    conditional_forward = jax.random.normal(k_cond, (B, Q * Q), jnp.float32)
    state = cell.get_initial_state(batch_size=B, dtype=jnp.float32)

    # 1) Module-compatible single step.
    out, (_new_fwd, new_ll) = cell.forward(conditional_forward, state)
    out = jax.block_until_ready(out)
    new_ll = jax.block_until_ready(new_ll)
    ref_fwd, ref_ll = _reference_forward(conditional_forward, state[0], Q)
    np.testing.assert_allclose(np.asarray(out), np.asarray(ref_fwd),
                               rtol=1e-5, atol=1e-5)
    np.testing.assert_allclose(np.asarray(new_ll), np.asarray(ref_ll),
                               rtol=1e-5, atol=1e-5)

    # 2) Lane-dense fast path (producer supplies the (Q, Q, B) layout).
    cond_qqb = jnp.transpose(conditional_forward.reshape(B, Q, Q), (1, 2, 0))
    old_qb = jnp.transpose(state[0], (1, 0))
    fwd_qb = jax.block_until_ready(total_probability_step_qqb(cond_qqb, old_qb))
    np.testing.assert_allclose(np.asarray(fwd_qb.T), np.asarray(ref_fwd),
                               rtol=1e-5, atol=1e-5)

    # 3) Sequence-fused recurrence over T chunks in a single pallas_call.
    cond_seq_qqb = jax.random.normal(k_seq, (T, Q, Q, B), jnp.float32)
    fwd_seq_qb = jax.block_until_ready(
        total_probability_scan_qqb(cond_seq_qqb, old_qb))
    ref_seq = _reference_scan(cond_seq_qqb, state[0])      # (T, B, Q)
    np.testing.assert_allclose(
        np.asarray(jnp.transpose(fwd_seq_qb, (0, 2, 1))), np.asarray(ref_seq),
        rtol=1e-5, atol=1e-5)

    print("KERNEL_OK")
</pallas_src>

<mosaic_0001>
module attributes {stable_mosaic.version = 11 : i64} {
  func.func @kernel(%arg0: i32, %arg1: memref<16x16x128xf32, #tpu.memory_space<vmem>>, %arg2: memref<16x128xf32, #tpu.memory_space<vmem>>, %arg3: memref<16x128xf32, #tpu.memory_space<vmem>>) attributes {dimension_semantics = [#tpu.dimension_semantics<parallel>], iteration_bounds = array<i64: 2>, scalar_prefetch = 0 : i64, scratch_operands = 0 : i64, tpu.core_type = #tpu.core_type<tc>, window_params = [{transform_indices = @transform_0, window_bounds = array<i64: 16, 16, 128>}, {transform_indices = @transform_1, window_bounds = array<i64: 16, 128>}, {transform_indices = @transform_2, window_bounds = array<i64: 16, 128>}]} {
    %cst = arith.constant 0xFF800000 : f32
    %0 = vector.broadcast %cst : f32 to vector<16x128xf32>
    %cst_0 = arith.constant 0.000000e+00 : f32
    %1 = vector.broadcast %cst_0 : f32 to vector<16x128xf32>
    %c0_i32 = arith.constant 0 : i32
    %2 = arith.index_cast %c0_i32 : i32 to index
    %c0 = arith.constant 0 : index
    %3 = vector.load %arg2[%2, %c0] : memref<16x128xf32, #tpu.memory_space<vmem>>, vector<1x128xf32>
    %4 = arith.index_cast %c0_i32 : i32 to index
    %c0_1 = arith.constant 0 : index
    %c0_2 = arith.constant 0 : index
    %5 = vector.load %arg1[%4, %c0_1, %c0_2] : memref<16x16x128xf32, #tpu.memory_space<vmem>>, vector<1x16x128xf32>
    %6 = vector.shape_cast %5 : vector<1x16x128xf32> to vector<16x128xf32>
    %7 = vector.broadcast %3 : vector<1x128xf32> to vector<16x128xf32>
    %8 = arith.addf %6, %7 : vector<16x128xf32>
    %9 = arith.maximumf %0, %8 : vector<16x128xf32>
    %cst_3 = arith.constant -1.000000e+30 : f32
    %10 = vector.broadcast %cst_3 : f32 to vector<16x128xf32>
    %11 = arith.maximumf %9, %10 : vector<16x128xf32>
    %12 = arith.subf %0, %11 : vector<16x128xf32>
    %13 = math.exp %12 : vector<16x128xf32>
    %14 = arith.mulf %1, %13 : vector<16x128xf32>
    %15 = arith.subf %8, %11 : vector<16x128xf32>
    %16 = math.exp %15 : vector<16x128xf32>
    %17 = arith.addf %14, %16 : vector<16x128xf32>
    %c1_i32 = arith.constant 1 : i32
    %18 = arith.index_cast %c1_i32 : i32 to index
    %c0_4 = arith.constant 0 : index
    %19 = vector.load %arg2[%18, %c0_4] : memref<16x128xf32, #tpu.memory_space<vmem>>, vector<1x128xf32>
    %20 = arith.index_cast %c1_i32 : i32 to index
    %c0_5 = arith.constant 0 : index
    %c0_6 = arith.constant 0 : index
    %21 = vector.load %arg1[%20, %c0_5, %c0_6] : memref<16x16x128xf32, #tpu.memory_space<vmem>>, vector<1x16x128xf32>
    %22 = vector.shape_cast %21 : vector<1x16x128xf32> to vector<16x128xf32>
    %23 = vector.broadcast %19 : vector<1x128xf32> to vector<16x128xf32>
    %24 = arith.addf %22, %23 : vector<16x128xf32>
    %25 = arith.maximumf %9, %24 : vector<16x128xf32>
    %cst_7 = arith.constant -1.000000e+30 : f32
    %26 = vector.broadcast %cst_7 : f32 to vector<16x128xf32>
    %27 = arith.maximumf %25, %26 : vector<16x128xf32>
    %28 = arith.subf %9, %27 : vector<16x128xf32>
    %29 = math.exp %28 : vector<16x128xf32>
    %30 = arith.mulf %17, %29 : vector<16x128xf32>
    %31 = arith.subf %24, %27 : vector<16x128xf32>
    %32 = math.exp %31 : vector<16x128xf32>
    %33 = arith.addf %30, %32 : vector<16x128xf32>
    %c2_i32 = arith.constant 2 : i32
    %34 = arith.index_cast %c2_i32 : i32 to index
    %c0_8 = arith.constant 0 : index
    %35 = vector.load %arg2[%34, %c0_8] : memref<16x128xf32, #tpu.memory_space<vmem>>, vector<1x128xf32>
    %36 = arith.index_cast %c2_i32 : i32 to index
    %c0_9 = arith.constant 0 : index
    %c0_10 = arith.constant 0 : index
    %37 = vector.load %arg1[%36, %c0_9, %c0_10] : memref<16x16x128xf32, #tpu.memory_space<vmem>>, vector<1x16x128xf32>
    %38 = vector.shape_cast %37 : vector<1x16x128xf32> to vector<16x128xf32>
    %39 = vector.broadcast %35 : vector<1x128xf32> to vector<16x128xf32>
    %40 = arith.addf %38, %39 : vector<16x128xf32>
    %41 = arith.maximumf %25, %40 : vector<16x128xf32>
    %cst_11 = arith.constant -1.000000e+30 : f32
    %42 = vector.broadcast %cst_11 : f32 to vector<16x128xf32>
    %43 = arith.maximumf %41, %42 : vector<16x128xf32>
    %44 = arith.subf %25, %43 : vector<16x128xf32>
    %45 = math.exp %44 : vector<16x128xf32>
    %46 = arith.mulf %33, %45 : vector<16x128xf32>
    %47 = arith.subf %40, %43 : vector<16x128xf32>
    %48 = math.exp %47 : vector<16x128xf32>
    %49 = arith.addf %46, %48 : vector<16x128xf32>
    %c3_i32 = arith.constant 3 : i32
    %50 = arith.index_cast %c3_i32 : i32 to index
    %c0_12 = arith.constant 0 : index
    %51 = vector.load %arg2[%50, %c0_12] : memref<16x128xf32, #tpu.memory_space<vmem>>, vector<1x128xf32>
    %52 = arith.index_cast %c3_i32 : i32 to index
    %c0_13 = arith.constant 0 : index
    %c0_14 = arith.constant 0 : index
    %53 = vector.load %arg1[%52, %c0_13, %c0_14] : memref<16x16x128xf32, #tpu.memory_space<vmem>>, vector<1x16x128xf32>
    %54 = vector.shape_cast %53 : vector<1x16x128xf32> to vector<16x128xf32>
    %55 = vector.broadcast %51 : vector<1x128xf32> to vector<16x128xf32>
    %56 = arith.addf %54, %55 : vector<16x128xf32>
    %57 = arith.maximumf %41, %56 : vector<16x128xf32>
    %cst_15 = arith.constant -1.000000e+30 : f32
    %58 = vector.broadcast %cst_15 : f32 to vector<16x128xf32>
    %59 = arith.maximumf %57, %58 : vector<16x128xf32>
    %60 = arith.subf %41, %59 : vector<16x128xf32>
    %61 = math.exp %60 : vector<16x128xf32>
    %62 = arith.mulf %49, %61 : vector<16x128xf32>
    %63 = arith.subf %56, %59 : vector<16x128xf32>
    %64 = math.exp %63 : vector<16x128xf32>
    %65 = arith.addf %62, %64 : vector<16x128xf32>
    %c4_i32 = arith.constant 4 : i32
    %66 = arith.index_cast %c4_i32 : i32 to index
    %c0_16 = arith.constant 0 : index
    %67 = vector.load %arg2[%66, %c0_16] : memref<16x128xf32, #tpu.memory_space<vmem>>, vector<1x128xf32>
    %68 = arith.index_cast %c4_i32 : i32 to index
    %c0_17 = arith.constant 0 : index
    %c0_18 = arith.constant 0 : index
    %69 = vector.load %arg1[%68, %c0_17, %c0_18] : memref<16x16x128xf32, #tpu.memory_space<vmem>>, vector<1x16x128xf32>
    %70 = vector.shape_cast %69 : vector<1x16x128xf32> to vector<16x128xf32>
    %71 = vector.broadcast %67 : vector<1x128xf32> to vector<16x128xf32>
    %72 = arith.addf %70, %71 : vector<16x128xf32>
    %73 = arith.maximumf %57, %72 : vector<16x128xf32>
    %cst_19 = arith.constant -1.000000e+30 : f32
    %74 = vector.broadcast %cst_19 : f32 to vector<16x128xf32>
    %75 = arith.maximumf %73, %74 : vector<16x128xf32>
    %76 = arith.subf %57, %75 : vector<16x128xf32>
    %77 = math.exp %76 : vector<16x128xf32>
    %78 = arith.mulf %65, %77 : vector<16x128xf32>
    %79 = arith.subf %72, %75 : vector<16x128xf32>
    %80 = math.exp %79 : vector<16x128xf32>
    %81 = arith.addf %78, %80 : vector<16x128xf32>
    %c5_i32 = arith.constant 5 : i32
    %82 = arith.index_cast %c5_i32 : i32 to index
    %c0_20 = arith.constant 0 : index
    %83 = vector.load %arg2[%82, %c0_20] : memref<16x128xf32, #tpu.memory_space<vmem>>, vector<1x128xf32>
    %84 = arith.index_cast %c5_i32 : i32 to index
    %c0_21 = arith.constant 0 : index
    %c0_22 = arith.constant 0 : index
    %85 = vector.load %arg1[%84, %c0_21, %c0_22] : memref<16x16x128xf32, #tpu.memory_space<vmem>>, vector<1x16x128xf32>
    %86 = vector.shape_cast %85 : vector<1x16x128xf32> to vector<16x128xf32>
    %87 = vector.broadcast %83 : vector<1x128xf32> to vector<16x128xf32>
    %88 = arith.addf %86, %87 : vector<16x128xf32>
    %89 = arith.maximumf %73, %88 : vector<16x128xf32>
    %cst_23 = arith.constant -1.000000e+30 : f32
    %90 = vector.broadcast %cst_23 : f32 to vector<16x128xf32>
    %91 = arith.maximumf %89, %90 : vector<16x128xf32>
    %92 = arith.subf %73, %91 : vector<16x128xf32>
    %93 = math.exp %92 : vector<16x128xf32>
    %94 = arith.mulf %81, %93 : vector<16x128xf32>
    %95 = arith.subf %88, %91 : vector<16x128xf32>
    %96 = math.exp %95 : vector<16x128xf32>
    %97 = arith.addf %94, %96 : vector<16x128xf32>
    %c6_i32 = arith.constant 6 : i32
    %98 = arith.index_cast %c6_i32 : i32 to index
    %c0_24 = arith.constant 0 : index
    %99 = vector.load %arg2[%98, %c0_24] : memref<16x128xf32, #tpu.memory_space<vmem>>, vector<1x128xf32>
    %100 = arith.index_cast %c6_i32 : i32 to index
    %c0_25 = arith.constant 0 : index
    %c0_26 = arith.constant 0 : index
    %101 = vector.load %arg1[%100, %c0_25, %c0_26] : memref<16x16x128xf32, #tpu.memory_space<vmem>>, vector<1x16x128xf32>
    %102 = vector.shape_cast %101 : vector<1x16x128xf32> to vector<16x128xf32>
    %103 = vector.broadcast %99 : vector<1x128xf32> to vector<16x128xf32>
    %104 = arith.addf %102, %103 : vector<16x128xf32>
    %105 = arith.maximumf %89, %104 : vector<16x128xf32>
    %cst_27 = arith.constant -1.000000e+30 : f32
    %106 = vector.broadcast %cst_27 : f32 to vector<16x128xf32>
    %107 = arith.maximumf %105, %106 : vector<16x128xf32>
    %108 = arith.subf %89, %107 : vector<16x128xf32>
    %109 = math.exp %108 : vector<16x128xf32>
    %110 = arith.mulf %97, %109 : vector<16x128xf32>
    %111 = arith.subf %104, %107 : vector<16x128xf32>
    %112 = math.exp %111 : vector<16x128xf32>
    %113 = arith.addf %110, %112 : vector<16x128xf32>
    %c7_i32 = arith.constant 7 : i32
    %114 = arith.index_cast %c7_i32 : i32 to index
    %c0_28 = arith.constant 0 : index
    %115 = vector.load %arg2[%114, %c0_28] : memref<16x128xf32, #tpu.memory_space<vmem>>, vector<1x128xf32>
    %116 = arith.index_cast %c7_i32 : i32 to index
    %c0_29 = arith.constant 0 : index
    %c0_30 = arith.constant 0 : index
    %117 = vector.load %arg1[%116, %c0_29, %c0_30] : memref<16x16x128xf32, #tpu.memory_space<vmem>>, vector<1x16x128xf32>
    %118 = vector.shape_cast %117 : vector<1x16x128xf32> to vector<16x128xf32>
    %119 = vector.broadcast %115 : vector<1x128xf32> to vector<16x128xf32>
    %120 = arith.addf %118, %119 : vector<16x128xf32>
    %121 = arith.maximumf %105, %120 : vector<16x128xf32>
    %cst_31 = arith.constant -1.000000e+30 : f32
    %122 = vector.broadcast %cst_31 : f32 to vector<16x128xf32>
    %123 = arith.maximumf %121, %122 : vector<16x128xf32>
    %124 = arith.subf %105, %123 : vector<16x128xf32>
    %125 = math.exp %124 : vector<16x128xf32>
    %126 = arith.mulf %113, %125 : vector<16x128xf32>
    %127 = arith.subf %120, %123 : vector<16x128xf32>
    %128 = math.exp %127 : vector<16x128xf32>
    %129 = arith.addf %126, %128 : vector<16x128xf32>
    %c8_i32 = arith.constant 8 : i32
    %130 = arith.index_cast %c8_i32 : i32 to index
    %c0_32 = arith.constant 0 : index
    %131 = vector.load %arg2[%130, %c0_32] : memref<16x128xf32, #tpu.memory_space<vmem>>, vector<1x128xf32>
    %132 = arith.index_cast %c8_i32 : i32 to index
    %c0_33 = arith.constant 0 : index
    %c0_34 = arith.constant 0 : index
    %133 = vector.load %arg1[%132, %c0_33, %c0_34] : memref<16x16x128xf32, #tpu.memory_space<vmem>>, vector<1x16x128xf32>
    %134 = vector.shape_cast %133 : vector<1x16x128xf32> to vector<16x128xf32>
    %135 = vector.broadcast %131 : vector<1x128xf32> to vector<16x128xf32>
    %136 = arith.addf %134, %135 : vector<16x128xf32>
    %137 = arith.maximumf %121, %136 : vector<16x128xf32>
    %cst_35 = arith.constant -1.000000e+30 : f32
    %138 = vector.broadcast %cst_35 : f32 to vector<16x128xf32>
    %139 = arith.maximumf %137, %138 : vector<16x128xf32>
    %140 = arith.subf %121, %139 : vector<16x128xf32>
    %141 = math.exp %140 : vector<16x128xf32>
    %142 = arith.mulf %129, %141 : vector<16x128xf32>
    %143 = arith.subf %136, %139 : vector<16x128xf32>
    %144 = math.exp %143 : vector<16x128xf32>
    %145 = arith.addf %142, %144 : vector<16x128xf32>
    %c9_i32 = arith.constant 9 : i32
    %146 = arith.index_cast %c9_i32 : i32 to index
    %c0_36 = arith.constant 0 : index
    %147 = vector.load %arg2[%146, %c0_36] : memref<16x128xf32, #tpu.memory_space<vmem>>, vector<1x128xf32>
    %148 = arith.index_cast %c9_i32 : i32 to index
    %c0_37 = arith.constant 0 : index
    %c0_38 = arith.constant 0 : index
    %149 = vector.load %arg1[%148, %c0_37, %c0_38] : memref<16x16x128xf32, #tpu.memory_space<vmem>>, vector<1x16x128xf32>
    %150 = vector.shape_cast %149 : vector<1x16x128xf32> to vector<16x128xf32>
    %151 = vector.broadcast %147 : vector<1x128xf32> to vector<16x128xf32>
    %152 = arith.addf %150, %151 : vector<16x128xf32>
    %153 = arith.maximumf %137, %152 : vector<16x128xf32>
    %cst_39 = arith.constant -1.000000e+30 : f32
    %154 = vector.broadcast %cst_39 : f32 to vector<16x128xf32>
    %155 = arith.maximumf %153, %154 : vector<16x128xf32>
    %156 = arith.subf %137, %155 : vector<16x128xf32>
    %157 = math.exp %156 : vector<16x128xf32>
    %158 = arith.mulf %145, %157 : vector<16x128xf32>
    %159 = arith.subf %152, %155 : vector<16x128xf32>
    %160 = math.exp %159 : vector<16x128xf32>
    %161 = arith.addf %158, %160 : vector<16x128xf32>
    %c10_i32 = arith.constant 10 : i32
    %162 = arith.index_cast %c10_i32 : i32 to index
    %c0_40 = arith.constant 0 : index
    %163 = vector.load %arg2[%162, %c0_40] : memref<16x128xf32, #tpu.memory_space<vmem>>, vector<1x128xf32>
    %164 = arith.index_cast %c10_i32 : i32 to index
    %c0_41 = arith.constant 0 : index
    %c0_42 = arith.constant 0 : index
    %165 = vector.load %arg1[%164, %c0_41, %c0_42] : memref<16x16x128xf32, #tpu.memory_space<vmem>>, vector<1x16x128xf32>
    %166 = vector.shape_cast %165 : vector<1x16x128xf32> to vector<16x128xf32>
    %167 = vector.broadcast %163 : vector<1x128xf32> to vector<16x128xf32>
    %168 = arith.addf %166, %167 : vector<16x128xf32>
    %169 = arith.maximumf %153, %168 : vector<16x128xf32>
    %cst_43 = arith.constant -1.000000e+30 : f32
    %170 = vector.broadcast %cst_43 : f32 to vector<16x128xf32>
    %171 = arith.maximumf %169, %170 : vector<16x128xf32>
    %172 = arith.subf %153, %171 : vector<16x128xf32>
    %173 = math.exp %172 : vector<16x128xf32>
    %174 = arith.mulf %161, %173 : vector<16x128xf32>
    %175 = arith.subf %168, %171 : vector<16x128xf32>
    %176 = math.exp %175 : vector<16x128xf32>
    %177 = arith.addf %174, %176 : vector<16x128xf32>
    %c11_i32 = arith.constant 11 : i32
    %178 = arith.index_cast %c11_i32 : i32 to index
    %c0_44 = arith.constant 0 : index
    %179 = vector.load %arg2[%178, %c0_44] : memref<16x128xf32, #tpu.memory_space<vmem>>, vector<1x128xf32>
    %180 = arith.index_cast %c11_i32 : i32 to index
    %c0_45 = arith.constant 0 : index
    %c0_46 = arith.constant 0 : index
    %181 = vector.load %arg1[%180, %c0_45, %c0_46] : memref<16x16x128xf32, #tpu.memory_space<vmem>>, vector<1x16x128xf32>
    %182 = vector.shape_cast %181 : vector<1x16x128xf32> to vector<16x128xf32>
    %183 = vector.broadcast %179 : vector<1x128xf32> to vector<16x128xf32>
    %184 = arith.addf %182, %183 : vector<16x128xf32>
    %185 = arith.maximumf %169, %184 : vector<16x128xf32>
    %cst_47 = arith.constant -1.000000e+30 : f32
    %186 = vector.broadcast %cst_47 : f32 to vector<16x128xf32>
    %187 = arith.maximumf %185, %186 : vector<16x128xf32>
    %188 = arith.subf %169, %187 : vector<16x128xf32>
    %189 = math.exp %188 : vector<16x128xf32>
    %190 = arith.mulf %177, %189 : vector<16x128xf32>
    %191 = arith.subf %184, %187 : vector<16x128xf32>
    %192 = math.exp %191 : vector<16x128xf32>
    %193 = arith.addf %190, %192 : vector<16x128xf32>
    %c12_i32 = arith.constant 12 : i32
    %194 = arith.index_cast %c12_i32 : i32 to index
    %c0_48 = arith.constant 0 : index
    %195 = vector.load %arg2[%194, %c0_48] : memref<16x128xf32, #tpu.memory_space<vmem>>, vector<1x128xf32>
    %196 = arith.index_cast %c12_i32 : i32 to index
    %c0_49 = arith.constant 0 : index
    %c0_50 = arith.constant 0 : index
    %197 = vector.load %arg1[%196, %c0_49, %c0_50] : memref<16x16x128xf32, #tpu.memory_space<vmem>>, vector<1x16x128xf32>
    %198 = vector.shape_cast %197 : vector<1x16x128xf32> to vector<16x128xf32>
    %199 = vector.broadcast %195 : vector<1x128xf32> to vector<16x128xf32>
    %200 = arith.addf %198, %199 : vector<16x128xf32>
    %201 = arith.maximumf %185, %200 : vector<16x128xf32>
    %cst_51 = arith.constant -1.000000e+30 : f32
    %202 = vector.broadcast %cst_51 : f32 to vector<16x128xf32>
    %203 = arith.maximumf %201, %202 : vector<16x128xf32>
    %204 = arith.subf %185, %203 : vector<16x128xf32>
    %205 = math.exp %204 : vector<16x128xf32>
    %206 = arith.mulf %193, %205 : vector<16x128xf32>
    %207 = arith.subf %200, %203 : vector<16x128xf32>
    %208 = math.exp %207 : vector<16x128xf32>
    %209 = arith.addf %206, %208 : vector<16x128xf32>
    %c13_i32 = arith.constant 13 : i32
    %210 = arith.index_cast %c13_i32 : i32 to index
    %c0_52 = arith.constant 0 : index
    %211 = vector.load %arg2[%210, %c0_52] : memref<16x128xf32, #tpu.memory_space<vmem>>, vector<1x128xf32>
    %212 = arith.index_cast %c13_i32 : i32 to index
    %c0_53 = arith.constant 0 : index
    %c0_54 = arith.constant 0 : index
    %213 = vector.load %arg1[%212, %c0_53, %c0_54] : memref<16x16x128xf32, #tpu.memory_space<vmem>>, vector<1x16x128xf32>
    %214 = vector.shape_cast %213 : vector<1x16x128xf32> to vector<16x128xf32>
    %215 = vector.broadcast %211 : vector<1x128xf32> to vector<16x128xf32>
    %216 = arith.addf %214, %215 : vector<16x128xf32>
    %217 = arith.maximumf %201, %216 : vector<16x128xf32>
    %cst_55 = arith.constant -1.000000e+30 : f32
    %218 = vector.broadcast %cst_55 : f32 to vector<16x128xf32>
    %219 = arith.maximumf %217, %218 : vector<16x128xf32>
    %220 = arith.subf %201, %219 : vector<16x128xf32>
    %221 = math.exp %220 : vector<16x128xf32>
    %222 = arith.mulf %209, %221 : vector<16x128xf32>
    %223 = arith.subf %216, %219 : vector<16x128xf32>
    %224 = math.exp %223 : vector<16x128xf32>
    %225 = arith.addf %222, %224 : vector<16x128xf32>
    %c14_i32 = arith.constant 14 : i32
    %226 = arith.index_cast %c14_i32 : i32 to index
    %c0_56 = arith.constant 0 : index
    %227 = vector.load %arg2[%226, %c0_56] : memref<16x128xf32, #tpu.memory_space<vmem>>, vector<1x128xf32>
    %228 = arith.index_cast %c14_i32 : i32 to index
    %c0_57 = arith.constant 0 : index
    %c0_58 = arith.constant 0 : index
    %229 = vector.load %arg1[%228, %c0_57, %c0_58] : memref<16x16x128xf32, #tpu.memory_space<vmem>>, vector<1x16x128xf32>
    %230 = vector.shape_cast %229 : vector<1x16x128xf32> to vector<16x128xf32>
    %231 = vector.broadcast %227 : vector<1x128xf32> to vector<16x128xf32>
    %232 = arith.addf %230, %231 : vector<16x128xf32>
    %233 = arith.maximumf %217, %232 : vector<16x128xf32>
    %cst_59 = arith.constant -1.000000e+30 : f32
    %234 = vector.broadcast %cst_59 : f32 to vector<16x128xf32>
    %235 = arith.maximumf %233, %234 : vector<16x128xf32>
    %236 = arith.subf %217, %235 : vector<16x128xf32>
    %237 = math.exp %236 : vector<16x128xf32>
    %238 = arith.mulf %225, %237 : vector<16x128xf32>
    %239 = arith.subf %232, %235 : vector<16x128xf32>
    %240 = math.exp %239 : vector<16x128xf32>
    %241 = arith.addf %238, %240 : vector<16x128xf32>
    %c15_i32 = arith.constant 15 : i32
    %242 = arith.index_cast %c15_i32 : i32 to index
    %c0_60 = arith.constant 0 : index
    %243 = vector.load %arg2[%242, %c0_60] : memref<16x128xf32, #tpu.memory_space<vmem>>, vector<1x128xf32>
    %244 = arith.index_cast %c15_i32 : i32 to index
    %c0_61 = arith.constant 0 : index
    %c0_62 = arith.constant 0 : index
    %245 = vector.load %arg1[%244, %c0_61, %c0_62] : memref<16x16x128xf32, #tpu.memory_space<vmem>>, vector<1x16x128xf32>
    %246 = vector.shape_cast %245 : vector<1x16x128xf32> to vector<16x128xf32>
    %247 = vector.broadcast %243 : vector<1x128xf32> to vector<16x128xf32>
    %248 = arith.addf %246, %247 : vector<16x128xf32>
    %249 = arith.maximumf %233, %248 : vector<16x128xf32>
    %cst_63 = arith.constant -1.000000e+30 : f32
    %250 = vector.broadcast %cst_63 : f32 to vector<16x128xf32>
    %251 = arith.maximumf %249, %250 : vector<16x128xf32>
    %252 = arith.subf %233, %251 : vector<16x128xf32>
    %253 = math.exp %252 : vector<16x128xf32>
    %254 = arith.mulf %241, %253 : vector<16x128xf32>
    %255 = arith.subf %248, %251 : vector<16x128xf32>
    %256 = math.exp %255 : vector<16x128xf32>
    %257 = arith.addf %254, %256 : vector<16x128xf32>
    %c16_i32 = arith.constant 16 : i32
    %258 = math.log %257 : vector<16x128xf32>
    %cst_64 = arith.constant -1.000000e+30 : f32
    %259 = vector.broadcast %cst_64 : f32 to vector<16x128xf32>
    %260 = arith.maximumf %249, %259 : vector<16x128xf32>
    %261 = arith.addf %258, %260 : vector<16x128xf32>
    %c0_65 = arith.constant 0 : index
    %c0_66 = arith.constant 0 : index
    %262 = vector.load %arg3[%c0_65, %c0_66] : memref<16x128xf32, #tpu.memory_space<vmem>>, vector<16x128xf32>
    tpu.vector_store %arg3[%c0_65, %c0_66], %261 {strides = array<i32>} : memref<16x128xf32, #tpu.memory_space<vmem>>, vector<16x128xf32>,
    return
  }
  func.func @transform_0(%arg0: i32) -> (i32, i32, i32) {
    %c0_i32 = arith.constant 0 : i32
    %c0_i32_0 = arith.constant 0 : i32
    %c0_i32_1 = arith.constant 0 : i32
    return %c0_i32, %c0_i32_0, %arg0 : i32, i32, i32
  }
  func.func @transform_1(%arg0: i32) -> (i32, i32) {
    %c0_i32 = arith.constant 0 : i32
    %c0_i32_0 = arith.constant 0 : i32
    return %c0_i32, %arg0 : i32, i32
  }
  func.func @transform_2(%arg0: i32) -> (i32, i32) {
    %c0_i32 = arith.constant 0 : i32
    %c0_i32_0 = arith.constant 0 : i32
    return %c0_i32, %arg0 : i32, i32
  }
}

</mosaic_0001>

<bundles_post_ra>
// kernel: tpu_custom_call.1
= control target key start
LH: loop header
LB: loop body
LE: loop exit
PB: predicated region body
PF: predicated region fallthrough
CT: control target
= control target key end

     0   :  { %7 = vsyncpa [#allocation3], 0  ;;  %s1497_s0 = inlined_call_operand.hbm [shape: f32[16,16,256], index: 0, kind: input, shape index: {}]   ;;  %s1498_s1 = inlined_call_operand.hbm [shape: f32[16,256], index: 1, kind: input, shape index: {}]   ;;  %s1499_s2 = inlined_call_operand.hbm [shape: f32[16,256], index: 2, kind: output, shape index: {}]  }
   0x1   :  { %9 = vsyncpa [#allocation3 + $0x1], 0 }
   0x2   :  { %10 = vsyncpa [#allocation6], 0 }
   0x3   :  { %12 = vsyncpa [#allocation6 + $0x1], 0 }
   0x4   :  { %13 = vsyncpa [#allocation4], 0 }
   0x5   :  { %15 = vsyncpa [#allocation4 + $0x1], 0  ;;  %s1200_s9 = smov 0   ;;  %s1202_s10 = smov 0  }
   0x6   :  { %s1204_s11 = smov 0   ;;  %s1206_s12 = smov 0  }
   0x7 LB: > { %s1221_s13 = sadd.s32 4294967295, %s1174_s12   ;;  %s794_s14 = sadd.s32 4294967294, %s1174_s12   ;;  %s1174_s12 = sphi %s1206_s12, %s1516_s12   ;;  %s1170_s11 = sphi %s1204_s11, %s1515_s11   ;;  %s1166_s10 = sphi %s1202_s10, %s1514_s10   ;;  %s1162_s9 = sphi %s1200_s9, %s1513_s9  }
   0x8   : > { %s1225_s15 = sadd.s32 1, %s1174_s12   ;;  %s28_s16 = sadd.s32 1, %s1170_s11 }
   0x9   : > { %s25_s17 = ssub.s32 %s1174_s12, %s1225_s15  ;;  %p35_p0 = scmp.ne.s32.totalorder %s1170_s11, %s1166_s10 }
   0xa   : > { %p26_p1 = scmp.eq.s32.totalorder %s25_s17, 0  ;;  %p36_p2 = scmp.eq.s32.totalorder %s1174_s12, 0 }
   0xb   : > { %p41_p3 = scmp.ne.s32.totalorder %s1166_s10, %s1162_s9  ;;  %p42_p4 = scmp.eq.s32.totalorder %s1221_s13, 0 }
   0xc   : > { %s1237_s18 = scalar_select %p26_p1, %s1170_s11, %s28_s16  }
   0xd   : > { %p1239_p5 = por %p36_p2, %p35_p0  ;;  %p1243_p6 = por %p42_p4, %p41_p3 }
   0xe   : > { %p91_p7 = scmp.eq.s32.totalorder %s1221_s13, 1  ;;  %p97_p8 = scmp.eq.s32.totalorder %s794_s14, 1 }
   0xf   : > { %s1503_s20 = scalar_select %p1243_p6, 1, 0 }
  0x10   : > { %p872_p10 = scmp.lt.s32.totalorder %s1174_s12, 2  ;;  %p1250_p11 = por %p91_p7, %p35_p0 }
  0x11   : > { %p1254_p12 = por %p97_p8, %p41_p3  ;;  %s1259_s23 = sand.u32 1, %s1170_s11  }
  0x12   : > { %s1504_s21 = scalar_select %p1250_p11, 1, 0 }
  0x13   : > { %s1505_s22 = scalar_select %p1254_p12, 1, 0 }
  0x14   : > { %s798_s24 = sshll.u32 %s1174_s12, 7  ;;  %s797_s25 = sshll.u32 %s1259_s23, 8 }
  0x15   : > { %s1268_s28 = scalar_lea.hbm %s1497_s0, %s798_s24  ;;  %s121_s29 = scalar_lea.vmem [#allocation2], %s797_s25 }
  0x16   : > { %s127_s30 = sshll.u32 %s121_s29, 4  ;;  %p1272_p13 = pnand %p872_p10, %p1239_p5  ;;  %s1276_s30 = int_to_ptr.vmem [resolvable:$true] %s127_s30 }
  0x17   : > { %s118_s4 = scalar_lea.sflag [#allocation3], %s1259_s23  ;;  %s1044_s5 = scalar_lea.hbm %s1268_s28, 4096 }
  0x18   : > { %p1045_p1 = scmp.ne.s32.totalorder %s1268_s28, %s1044_s5  ;;  %p1046_p2 = pneg %p1272_p13 }
  0x19   : > { %s1049_s8 = scalar_lea.hbm %s1497_s0, 8192  ;;  %p1050_p5 = scmp.lt.u32.totalorder %s1268_s28, %s1497_s0 }
  0x1a   : > { %p1047_p3 = pnand %p1046_p2, %p1045_p1  ;;  %p1051_p7 = scmp.lt.u32.totalorder %s1049_s8, %s1044_s5 }
  0x1b   : > { %p1053_p10 = scmp.lt.u32.totalorder %s1044_s5, %s1268_s28 }
  0x1c   : > { %p1048_p4 = pneg %p1047_p3  ;;  %p1052_p8 = por %p1051_p7, %p1050_p5 }
  0x1e   : > { %p1054_p9 = por %p1053_p10, %p1052_p8 }
  0x20   : > { %p1055_p0 = pnand %p1054_p9, %p1048_p4 }
  0x22   : > { %1058 = shalt.err (!%p1055_p0)
}
  0x23   : > { %s1059_s17 = scalar_lea.vmem %s1276_s30, 4096  ;;  %s1176_s19 = smov [#allocation2]  }
  0x24   : > { %p1060_p1 = scmp.ne.s32.totalorder %s1276_s30, %s1059_s17  ;;  %s1064_s25 = sshll.u32 %s1176_s19, 4  ;;  %s1065_s25 = int_to_ptr.vmem [resolvable:$false] %s1064_s25 }
  0x25   : > { %s1066_s26 = scalar_lea.vmem %s1065_s25, 8192  ;;  %p1067_p11 = scmp.lt.s32.totalorder %s1276_s30, %s1065_s25 }
  0x26   : > { %p1062_p3 = pnand %p1060_p1, %p1046_p2  ;;  %p1068_p5 = scmp.lt.s32.totalorder %s1066_s26, %s1059_s17 }
  0x28   : > { %p1063_p12 = pneg %p1062_p3  ;;  %p1069_p7 = por %p1068_p5, %p1067_p11 }
  0x2a   : > { %p1070_p8 = pnand %p1069_p7, %p1063_p12 }
  0x2c   : > { %1073 = shalt.err (!%p1070_p8)
}
  0x2d   : > { %s1177_s27 = smov 256   ;;  %s1178_s29 = smov 128  }
  0x2e   : > { %s1179_s5 = smov 8   ;;  %p155_p9 = scmp.lt.s32.totalorder %s1174_s12, 3 }
  0x2f   : > { %864 = dma.hbm_to_vmem [thread:$0]  (!%p1272_p13), %s1268_s28, 4096, %s1276_s30, %s118_s4, %s1177_s27, %s1178_s29, %s1179_s5  }
  0x30   : > { %s799_s6 = sshll.u32 %s1259_s23, 4  ;;  %s1317_s14 = scalar_lea.hbm %s1498_s1, %s798_s24 }
  0x31   : > { %p1507_p11 = scmp.ge.s32.totalorder %s1174_s12, 1  ;;  %s141_s17 = scalar_lea.vmem [#allocation5], %s799_s6 }
  0x32   : > { %s147_s19 = sshll.u32 %s141_s17, 4  ;;  %s138_s28 = scalar_lea.sflag [#allocation6], %s1259_s23  ;;  %s1325_s19 = int_to_ptr.vmem [resolvable:$true] %s147_s19 }
  0x33   : > { %p1321_p12 = pnand %p1507_p11, %p155_p9  ;;  %s1074_s30 = scalar_lea.hbm %s1317_s14, 256 }
  0x34   : > { %p1075_p0 = scmp.ne.s32.totalorder %s1317_s14, %s1074_s30  ;;  %s1079_s25 = scalar_lea.hbm %s1498_s1, 512 }
  0x35   : > { %p1080_p1 = scmp.lt.u32.totalorder %s1317_s14, %s1498_s1  ;;  %p1081_p3 = scmp.lt.u32.totalorder %s1079_s25, %s1074_s30 }
  0x36   : > { %p1077_p4 = pnand %p1075_p0, %p1046_p2  ;;  %p1083_p7 = scmp.lt.u32.totalorder %s1074_s30, %s1317_s14 }
  0x37   : > { %p1082_p5 = por %p1081_p3, %p1080_p1 }
  0x38   : > { %p1078_p10 = pneg %p1077_p4 }
  0x39   : > { %p1084_p8 = por %p1083_p7, %p1082_p5 }
  0x3b   : > { %p1085_p9 = pnand %p1084_p8, %p1078_p10 }
  0x3d   : > { %1088 = shalt.err (!%p1085_p9)
}
  0x3e   : > { %s1089_s6 = scalar_lea.vmem %s1325_s19, 256  ;;  %s1180_s8 = smov [#allocation5]  }
  0x3f   : > { %p1090_p11 = scmp.ne.s32.totalorder %s1325_s19, %s1089_s6  ;;  %s1094_s17 = sshll.u32 %s1180_s8, 4  ;;  %s1095_s17 = int_to_ptr.vmem [resolvable:$false] %s1094_s17 }
  0x40   : > { %s1096_s24 = scalar_lea.vmem %s1095_s17, 512  ;;  %p1097_p6 = scmp.lt.s32.totalorder %s1325_s19, %s1095_s17 }
  0x41   : > { %p1092_p0 = pnand %p1090_p11, %p1046_p2  ;;  %p1098_p1 = scmp.lt.s32.totalorder %s1096_s24, %s1089_s6 }
  0x43   : > { %p1093_p4 = pneg %p1092_p0  ;;  %p1099_p3 = por %p1098_p1, %p1097_p6 }
  0x45   : > { %p1100_p5 = pnand %p1099_p3, %p1093_p4 }
  0x47   : > { %1103 = shalt.err (!%p1100_p5)
}
  0x48   : > { %867 = dma.hbm_to_vmem [thread:$0]  (!%p1272_p13), %s1317_s14, 256, %s1325_s19, %s138_s28, %s1177_s27, %s1178_s29, %s1179_s5  }
  0x49   : > { %159 = sbr.rel (%p1321_p12) target bundleno = 219 (0xdb), region = 28  ;;  %s1359_s30 = sand.u32 (!%p1321_p12), 1, %s1166_s10  }
  0x4a   : > { %s802_s4 = sshll.u32 (!%p1321_p12), %s1359_s30, 8  ;;  %s162_s25 = scalar_lea.sflag (!%p1321_p12), [#allocation3], %s1359_s30 }
  0x4b   : > { %s1363_s3 = scalar_lea.vmem (!%p1321_p12), [#allocation2], %s802_s4  ;;  %p1509_p6 = scmp.ne.s32.totalorder (!%p1321_p12), %s1503_s20, 0 }
  0x50   : > { %1149 = dma.done.wait (%p1509_p6), %s162_s25, 4096  }
  0x51   : > { %1151 = vsyncadd (%p1509_p6), %s162_s25, 4294963200  ;;  %s803_s23 = sshll.u32 %s1359_s30, 4  ;;  %s171_s27 = scalar_lea.sflag [#allocation6], %s1359_s30 }
  0x52   : > { %s1373_s29 = scalar_lea.vmem [#allocation5], %s803_s23 }
  0x53   : > { %1153 = dma.done.wait (%p1509_p6), %s171_s27, 256  }
  0x54   : > { %1155 = vsyncadd (%p1509_p6), %s171_s27, 4294967040  ;;  %v805_v0 = vld [vmem:[%s1373_s29] ss:$0 sm:$0xff]  ;;  %v202_v2 = vld [vmem:[%s1363_s3 + $0x8] sm:$0xff]  ;;  %s852_s20 = sshll.u32 %s1221_s13, 7  ;;  %s199_s5 = scalar_lea.vmem [#allocation7], %s803_s23 }
  0x55   : > { %v201_v1 = vld [vmem:[%s1363_s3] sm:$0xff]  ;;  %v208_v4 = vadd.f32 %v805_v0, %v202_v2  ;;  %v806_v6 = vld [vmem:[%s1363_s3 + $0x10] sm:$0xff]  ;;  %v807_v7 = vld [vmem:[%s1363_s3 + $0x18] sm:$0xff]  ;;  %s698_s14 = sshll.u32 %s199_s5, 4  ;;  %s1451_s28 = scalar_lea.hbm %s1499_s2, %s852_s20  ;;  %s1453_s14 = int_to_ptr.vmem [resolvable:$true] %s698_s14 }
  0x56   : > { %v207_v3 = vadd.f32 %v805_v0, %v201_v1  ;;  %v808_v5 = vld [vmem:[%s1373_s29 + $0x1] ss:$0 sm:$0xff]  ;;  %v811_v10 = vld [vmem:[%s1373_s29 + $0x2] ss:$0 sm:$0xff]  ;;  %v810_v12 = vld [vmem:[%s1363_s3 + $0x28] sm:$0xff]  ;;  %s686_s13 = scalar_lea.sflag [#allocation4], %s1359_s30 }
  0x57   : > { %v235_v8 = vadd.f32 %v808_v5, %v806_v6  ;;  %v236_v9 = vadd.f32 %v808_v5, %v807_v7  ;;  %v809_v11 = vld [vmem:[%s1363_s3 + $0x20] sm:$0xff]  ;;  %v210_v14 = vmax.f32 %v208_v4, -1e+30  ;;  %v266_v16 = vadd.f32 %v811_v10, %v810_v12  ;;  %v812_v20 = vld [vmem:[%s1363_s3 + $0x30] sm:$0xff]  ;;  %v813_v40 = vld [vmem:[%s1363_s3 + $0x38] sm:$0xff]  ;;  %s1104_s26 = scalar_lea.vmem %s1453_s14, 256 }
  0x58   : > { %v209_v13 = vmax.f32 %v207_v3, -1e+30  ;;  %v265_v15 = vadd.f32 %v811_v10, %v809_v11  ;;  %v814_v19 = vld [vmem:[%s1373_s29 + $0x3] ss:$0 sm:$0xff]  ;;  %v817_v47 = vld [vmem:[%s1373_s29 + $0x4] ss:$0 sm:$0xff]  ;;  %p1105_p13 = scmp.ne.s32.totalorder %s1453_s14, %s1104_s26 }
  0x59   : > { %v237_v17 = vmax.f32 %v207_v3, %v235_v8  ;;  %v238_v18 = vmax.f32 %v208_v4, %v236_v9  ;;  %v212_v22 = vsub.f32 -inf, %v210_v14  ;;  %v220_v24 = vsub.f32 %v208_v4, %v210_v14  ;;  %v815_v51 = vld [vmem:[%s1363_s3 + $0x40] sm:$0xff]  ;;  %v816_v52 = vld [vmem:[%s1363_s3 + $0x48] sm:$0xff]  ;;  %v818_v57 = vld [vmem:[%s1363_s3 + $0x50] sm:$0xff]  ;;  %p1510_p2 = scmp.ne.s32.totalorder %s1504_s21, 0  ;;  %s1181_s7 = smov [#allocation7]  }
  0x5a   : > { %v211_v21 = vsub.f32 -inf, %v209_v13  ;;  %v219_v23 = vsub.f32 %v207_v3, %v209_v13  ;;  %v295_v32 = vadd.f32 %v814_v19, %v812_v20  ;;  %v296_v50 = vadd.f32 %v814_v19, %v813_v40  ;;  %v820_v53 = vld [vmem:[%s1373_s29 + $0x5] ss:$0 sm:$0xff]  ;;  %v819_v58 = vld [vmem:[%s1363_s3 + $0x58] sm:$0xff]  ;;  %s1108_s6 = sshll.u32 %s1181_s7, 4  ;;  %s1109_s6 = int_to_ptr.vmem [resolvable:$false] %s1108_s6 }
  0x5b   : > { %v239_v25 = vmax.f32 %v237_v17, -1e+30  ;;  %v240_v26 = vmax.f32 %v238_v18, -1e+30  ;;  %v267_v27 = vmax.f32 %v237_v17, %v265_v15  ;;  %v268_v28 = vmax.f32 %v238_v18, %v266_v16  ;;  %p1106_p12 = pnand %p1105_p13, %p1510_p2  ;;  %s1110_s8 = scalar_lea.vmem %s1109_s6, 512 }
  0x5c   : > { %v213_v29 = vmul.f32 1.442695, %v211_v21  ;;  %v215_v30 = vmul.f32 1.442695, %v212_v22  ;;  %v221_v31 = vmul.f32 1.442695, %v219_v23  ;;  %v325_v63 = vadd.f32 %v817_v47, %v815_v51  ;;  %p1111_p7 = scmp.lt.s32.totalorder %s1453_s14, %s1109_s6  ;;  %p1112_p8 = scmp.lt.s32.totalorder %s1110_s8, %s1104_s26 }
  0x5d   : > { %v223_v33 = vmul.f32 1.442695, %v220_v24  ;;  %v241_v34 = vsub.f32 %v207_v3, %v239_v25  ;;  %v242_v35 = vsub.f32 %v208_v4, %v240_v26  ;;  %v249_v36 = vsub.f32 %v235_v8, %v239_v25  ;;  %p1107_p10 = pneg %p1106_p12 }
  0x5e   : > { %912 = vpow2.f32 %v213_v29  ;;  %v250_v37 = vsub.f32 %v236_v9, %v240_v26  ;;  %v269_v38 = vmax.f32 %v267_v27, -1e+30  ;;  %v270_v39 = vmax.f32 %v268_v28, -1e+30  ;;  %p1113_p9 = por %p1112_p8, %p1111_p7 }
  0x5f   : > { %914 = vpow2.f32 %v215_v30  ;;  %v243_v41 = vmul.f32 1.442695, %v241_v34  ;;  %v245_v42 = vmul.f32 1.442695, %v242_v35  ;;  %v251_v43 = vmul.f32 1.442695, %v249_v36 }
  0x60   : > { %916 = vpow2.f32 %v221_v31  ;;  %v253_v44 = vmul.f32 1.442695, %v250_v37  ;;  %v271_v45 = vsub.f32 %v237_v17, %v269_v38  ;;  %v272_v46 = vsub.f32 %v238_v18, %v270_v39  ;;  %v823_v34 = vld [vmem:[%s1373_s29 + $0x6] ss:$0 sm:$0xff]  ;;  %p1114_p11 = pnand %p1113_p9, %p1107_p10 }
  0x61   : > { %918 = vpow2.f32 %v223_v33  ;;  %v279_v48 = vsub.f32 %v265_v15, %v269_v38  ;;  %v280_v49 = vsub.f32 %v266_v16, %v270_v39  ;;  %v297_v56 = vmax.f32 %v267_v27, %v295_v32  ;;  %v821_v35 = vld [vmem:[%s1363_s3 + $0x60] sm:$0xff] }
  0x62   : > { %920 = vpow2.f32 %v243_v41  ;;  %v273_v54 = vmul.f32 1.442695, %v271_v45  ;;  %v275_v55 = vmul.f32 1.442695, %v272_v46  ;;  %v298_v61 = vmax.f32 %v268_v28, %v296_v50 }
  0x63   : > { %922 = vpow2.f32 %v245_v42  ;;  %v281_v59 = vmul.f32 1.442695, %v279_v48  ;;  %v283_v60 = vmul.f32 1.442695, %v280_v49  ;;  %v299_v62 = vmax.f32 %v297_v56, -1e+30 }
  0x64   : > { %924 = vpow2.f32 %v251_v43  ;;  %v326_v0 = vadd.f32 %v817_v47, %v816_v52  ;;  %v300_v1 = vmax.f32 %v298_v61, -1e+30  ;;  %v355_v2 = vadd.f32 %v820_v53, %v818_v57 }
  0x65   : > { %926 = vpow2.f32 %v253_v44  ;;  %v1397_v3 = vadd.f32 %v820_v53, %v819_v58  ;;  %v301_v4 = vsub.f32 %v267_v27, %v299_v62  ;;  %v309_v5 = vsub.f32 %v295_v32, %v299_v62  ;;  %v822_v44 = vld [vmem:[%s1363_s3 + $0x68] sm:$0xff]  ;;  %v826_v58 = vld [vmem:[%s1373_s29 + $0x7] ss:$0 sm:$0xff] }
  0x66   : > { %928 = vpow2.f32 %v273_v54  ;;  %v327_v6 = vmax.f32 %v297_v56, %v325_v63  ;;  %v302_v7 = vsub.f32 %v268_v28, %v300_v1  ;;  %v310_v8 = vsub.f32 %v296_v50, %v300_v1  ;;  %v825_v1 = vld [vmem:[%s1363_s3 + $0x78] sm:$0xff] }
  0x67   : > { %930 = vpow2.f32 %v275_v55  ;;  %v328_v9 = vmax.f32 %v298_v61, %v326_v0  ;;  %v303_v11 = vmul.f32 1.442695, %v301_v4  ;;  %v311_v12 = vmul.f32 1.442695, %v309_v5 }
  0x68   : > { %v913_v10 = vpop.eup %912  ;;  %932 = vpow2.f32 %v281_v59  ;;  %v329_v13 = vmax.f32 %v327_v6, -1e+30  ;;  %v305_v16 = vmul.f32 1.442695, %v302_v7  ;;  %v313_v17 = vmul.f32 1.442695, %v310_v8 }
  0x69   : > { %v915_v14 = vpop.eup %914  ;;  %v217_v15 = vmul.f32 0.0, %v913_v10  ;;  %934 = vpow2.f32 %v283_v60  ;;  %v330_v20 = vmax.f32 %v328_v9, -1e+30  ;;  %v1399_v25 = vmax.f32 %v327_v6, %v355_v2  ;;  %v824_v59 = vld [vmem:[%s1363_s3 + $0x70] sm:$0xff] }
  0x6a   : > { %v917_v18 = vpop.eup %916  ;;  %v218_v19 = vmul.f32 0.0, %v915_v14  ;;  %936 = vpow2.f32 %v303_v11  ;;  %v331_v21 = vsub.f32 %v297_v56, %v329_v13  ;;  %v339_v24 = vsub.f32 %v325_v63, %v329_v13 }
  0x6b   : > { %v919_v22 = vpop.eup %918  ;;  %v225_v23 = vadd.f32 %v917_v18, %v217_v15  ;;  %938 = vpow2.f32 %v305_v16  ;;  %v332_v28 = vsub.f32 %v298_v61, %v330_v20  ;;  %v340_v32 = vsub.f32 %v326_v0, %v330_v20  ;;  %v827_v20 = vld [vmem:[%s1363_s3 + $0x80] sm:$0xff] }
  0x6c   : > { %v921_v26 = vpop.eup %920  ;;  %v226_v27 = vadd.f32 %v919_v22, %v218_v19  ;;  %940 = vpow2.f32 %v311_v12  ;;  %v333_v29 = vmul.f32 1.442695, %v331_v21  ;;  %v341_v33 = vmul.f32 1.442695, %v339_v24  ;;  %v829_v19 = vld [vmem:[%s1373_s29 + $0x8] ss:$0 sm:$0xff] }
  0x6d   : > { %v923_v30 = vpop.eup %922  ;;  %v247_v31 = vmul.f32 %v921_v26, %v225_v23  ;;  %942 = vpow2.f32 %v313_v17  ;;  %v335_v38 = vmul.f32 1.442695, %v332_v28  ;;  %v358_v39 = vmax.f32 %v328_v9, %v1397_v3 }
  0x6e   : > { %v925_v36 = vpop.eup %924  ;;  %v248_v37 = vmul.f32 %v923_v30, %v226_v27  ;;  %944 = vpow2.f32 %v333_v29  ;;  %v343_v42 = vmul.f32 1.442695, %v340_v32  ;;  %v359_v43 = vmax.f32 %v1399_v25, -1e+30 }
  0x6f   : > { %v927_v40 = vpop.eup %926  ;;  %v255_v41 = vadd.f32 %v925_v36, %v247_v31  ;;  %946 = vpow2.f32 %v341_v33  ;;  %v360_v47 = vmax.f32 %v358_v39, -1e+30  ;;  %v385_v48 = vadd.f32 %v823_v34, %v821_v35  ;;  %v828_v31 = vld [vmem:[%s1363_s3 + $0x88] sm:$0xff] }
  0x70   : > { %v929_v45 = vpop.eup %928  ;;  %v256_v46 = vadd.f32 %v927_v40, %v248_v37  ;;  %948 = vpow2.f32 %v335_v38  ;;  %v361_v51 = vsub.f32 %v327_v6, %v359_v43  ;;  %v369_v52 = vsub.f32 %v355_v2, %v359_v43  ;;  %v832_v43 = vld [vmem:[%s1373_s29 + $0x9] ss:$0 sm:$0xff] }
  0x71   : > { %v931_v49 = vpop.eup %930  ;;  %v277_v50 = vmul.f32 %v929_v45, %v255_v41  ;;  %950 = vpow2.f32 %v343_v42  ;;  %v362_v55 = vsub.f32 %v328_v9, %v360_v47  ;;  %v370_v56 = vsub.f32 %v1397_v3, %v360_v47 }
  0x72   : > { %v933_v53 = vpop.eup %932  ;;  %v278_v54 = vmul.f32 %v931_v49, %v256_v46  ;;  %v386_v57 = vadd.f32 %v823_v34, %v822_v44  ;;  %v363_v62 = vmul.f32 1.442695, %v361_v51  ;;  %v371_v63 = vmul.f32 1.442695, %v369_v52  ;;  %v830_v44 = vld [vmem:[%s1363_s3 + $0x90] sm:$0xff] }
  0x73   : > { %v935_v60 = vpop.eup %934  ;;  %v285_v61 = vadd.f32 %v933_v53, %v277_v50  ;;  %v387_v0 = vmax.f32 %v1399_v25, %v385_v48  ;;  %v365_v7 = vmul.f32 1.442695, %v362_v55  ;;  %v373_v6 = vmul.f32 1.442695, %v370_v56 }
  0x74   : > { %v937_v4 = vpop.eup %936  ;;  %v286_v5 = vadd.f32 %v935_v60, %v278_v54  ;;  %v388_v2 = vmax.f32 %v358_v39, %v386_v57  ;;  %952 = vpow2.f32 %v363_v62  ;;  %v415_v10 = vadd.f32 %v826_v58, %v824_v59 }
  0x75   : > { %v939_v8 = vpop.eup %938  ;;  %v307_v9 = vmul.f32 %v937_v4, %v285_v61  ;;  %v389_v3 = vmax.f32 %v387_v0, -1e+30  ;;  %954 = vpow2.f32 %v365_v7  ;;  %v416_v14 = vadd.f32 %v826_v58, %v825_v1  ;;  %v831_v1 = vld [vmem:[%s1363_s3 + $0x98] sm:$0xff] }
  0x76   : > { %v941_v11 = vpop.eup %940  ;;  %v308_v12 = vmul.f32 %v939_v8, %v286_v5  ;;  %v390_v13 = vmax.f32 %v388_v2, -1e+30  ;;  %956 = vpow2.f32 %v371_v63  ;;  %v417_v30 = vmax.f32 %v387_v0, %v415_v10  ;;  %v835_v4 = vld [vmem:[%s1373_s29 + $0xa] ss:$0 sm:$0xff]  ;;  %v833_v8 = vld [vmem:[%s1363_s3 + $0xa0] sm:$0xff] }
  0x77   : > { %v943_v15 = vpop.eup %942  ;;  %v315_v16 = vadd.f32 %v941_v11, %v307_v9  ;;  %v391_v17 = vsub.f32 %v1399_v25, %v389_v3  ;;  %v399_v18 = vsub.f32 %v385_v48, %v389_v3  ;;  %958 = vpow2.f32 %v373_v6  ;;  %v834_v9 = vld [vmem:[%s1363_s3 + $0xa8] sm:$0xff] }
  0x78   : > { %v945_v21 = vpop.eup %944  ;;  %v316_v22 = vadd.f32 %v943_v15, %v308_v12  ;;  %v392_v23 = vsub.f32 %v358_v39, %v390_v13  ;;  %v400_v24 = vsub.f32 %v386_v57, %v390_v13  ;;  %v418_v25 = vmax.f32 %v388_v2, %v416_v14  ;;  %v838_v3 = vld [vmem:[%s1373_s29 + $0xb] ss:$0 sm:$0xff]  ;;  %v836_v13 = vld [vmem:[%s1363_s3 + $0xb0] sm:$0xff] }
  0x79   : > { %v947_v26 = vpop.eup %946  ;;  %v337_v27 = vmul.f32 %v945_v21, %v315_v16  ;;  %v393_v28 = vmul.f32 1.442695, %v391_v17  ;;  %v401_v29 = vmul.f32 1.442695, %v399_v18  ;;  %v445_v35 = vadd.f32 %v829_v19, %v827_v20 }
  0x7a   : > { %v949_v32 = vpop.eup %948  ;;  %v395_v33 = vmul.f32 1.442695, %v392_v23  ;;  %v403_v34 = vmul.f32 1.442695, %v400_v24  ;;  %v419_v40 = vmax.f32 %v417_v30, -1e+30  ;;  %v446_v41 = vadd.f32 %v829_v19, %v828_v31 }
  0x7b   : > { %v951_v36 = vpop.eup %950  ;;  %v338_v37 = vmul.f32 %v949_v32, %v316_v22  ;;  %v345_v38 = vadd.f32 %v947_v26, %v337_v27  ;;  %960 = vpow2.f32 %v393_v28  ;;  %v420_v39 = vmax.f32 %v418_v25, -1e+30 }
  0x7c   : > { %962 = vpow2.f32 %v395_v33  ;;  %v1415_v42 = vmax.f32 %v417_v30, %v445_v35  ;;  %v421_v46 = vsub.f32 %v387_v0, %v419_v40  ;;  %v429_v47 = vsub.f32 %v415_v10, %v419_v40 }
  0x7d   : > { %v346_v45 = vadd.f32 %v951_v36, %v338_v37  ;;  %964 = vpow2.f32 %v401_v29  ;;  %v422_v48 = vsub.f32 %v388_v2, %v420_v39  ;;  %v430_v49 = vsub.f32 %v416_v14, %v420_v39 }
  0x7e   : > { %966 = vpow2.f32 %v403_v34  ;;  %v448_v50 = vmax.f32 %v418_v25, %v446_v41  ;;  %v953_v51 = vpop.eup %952  ;;  %v423_v52 = vmul.f32 1.442695, %v421_v46  ;;  %v431_v53 = vmul.f32 1.442695, %v429_v47 }
  0x7f   : > { %v449_v54 = vmax.f32 %v1415_v42, -1e+30  ;;  %v475_v55 = vadd.f32 %v832_v43, %v830_v44  ;;  %v955_v56 = vpop.eup %954  ;;  %v367_v57 = vmul.f32 %v953_v51, %v345_v38  ;;  %v425_v58 = vmul.f32 1.442695, %v422_v48 }
  0x80   : > { %v433_v59 = vmul.f32 1.442695, %v430_v49  ;;  %v450_v60 = vmax.f32 %v448_v50, -1e+30  ;;  %v957_v61 = vpop.eup %956  ;;  %v368_v62 = vmul.f32 %v955_v56, %v346_v45  ;;  %968 = vpow2.f32 %v423_v52  ;;  %v841_v56 = vld [vmem:[%s1373_s29 + $0xc] ss:$0 sm:$0xff] }
  0x81   : > { %v451_v63 = vsub.f32 %v417_v30, %v449_v54  ;;  %v459_v0 = vsub.f32 %v445_v35, %v449_v54  ;;  %v959_v5 = vpop.eup %958  ;;  %v375_v7 = vadd.f32 %v957_v61, %v367_v57  ;;  %970 = vpow2.f32 %v425_v58  ;;  %v837_v30 = vld [vmem:[%s1363_s3 + $0xb8] sm:$0xff]  ;;  %v839_v57 = vld [vmem:[%s1363_s3 + $0xc0] sm:$0xff] }
  0x82   : > { %v452_v6 = vsub.f32 %v418_v25, %v450_v60  ;;  %v460_v2 = vsub.f32 %v446_v41, %v450_v60  ;;  %v376_v10 = vadd.f32 %v959_v5, %v368_v62  ;;  %972 = vpow2.f32 %v431_v53  ;;  %v840_v62 = vld [vmem:[%s1363_s3 + $0xc8] sm:$0xff] }
  0x83   : > { %v453_v11 = vmul.f32 1.442695, %v451_v63  ;;  %v461_v12 = vmul.f32 1.442695, %v459_v0  ;;  %974 = vpow2.f32 %v433_v59  ;;  %v476_v16 = vadd.f32 %v832_v43, %v831_v1 }
  0x84   : > { %v455_v14 = vmul.f32 1.442695, %v452_v6  ;;  %v463_v15 = vmul.f32 1.442695, %v460_v2  ;;  %v477_v18 = vmax.f32 %v1415_v42, %v475_v55  ;;  %v505_v19 = vadd.f32 %v835_v4, %v833_v8 }
  0x85   : > { %v961_v17 = vpop.eup %960  ;;  %976 = vpow2.f32 %v453_v11  ;;  %v506_v20 = vadd.f32 %v835_v4, %v834_v9  ;;  %v478_v23 = vmax.f32 %v448_v50, %v476_v16  ;;  %v1427_v24 = vadd.f32 %v838_v3, %v836_v13 }
  0x86   : > { %v963_v21 = vpop.eup %962  ;;  %v397_v22 = vmul.f32 %v961_v17, %v375_v7  ;;  %978 = vpow2.f32 %v455_v14  ;;  %v479_v28 = vmax.f32 %v477_v18, -1e+30  ;;  %v507_v29 = vmax.f32 %v477_v18, %v505_v19 }
  0x87   : > { %v965_v26 = vpop.eup %964  ;;  %v398_v27 = vmul.f32 %v963_v21, %v376_v10  ;;  %980 = vpow2.f32 %v461_v12  ;;  %v480_v33 = vmax.f32 %v478_v23, -1e+30  ;;  %v508_v34 = vmax.f32 %v478_v23, %v506_v20 }
  0x88   : > { %v967_v31 = vpop.eup %966  ;;  %v405_v32 = vadd.f32 %v965_v26, %v397_v22  ;;  %982 = vpow2.f32 %v463_v15  ;;  %v481_v35 = vsub.f32 %v1415_v42, %v479_v28  ;;  %v489_v36 = vsub.f32 %v475_v55, %v479_v28  ;;  %v844_v15 = vld [vmem:[%s1373_s29 + $0xd] ss:$0 sm:$0xff] }
  0x89   : > { %v406_v25 = vadd.f32 %v967_v31, %v398_v27  ;;  %v509_v37 = vmax.f32 %v507_v29, -1e+30  ;;  %v482_v38 = vsub.f32 %v448_v50, %v480_v33  ;;  %v490_v40 = vsub.f32 %v476_v16, %v480_v33  ;;  %v842_v16 = vld [vmem:[%s1363_s3 + $0xd0] sm:$0xff] }
  0x8a   : > { %v510_v39 = vmax.f32 %v508_v34, -1e+30  ;;  %v536_v41 = vadd.f32 %v838_v3, %v837_v30  ;;  %v969_v43 = vpop.eup %968  ;;  %v483_v44 = vmul.f32 1.442695, %v481_v35  ;;  %v491_v45 = vmul.f32 1.442695, %v489_v36 }
  0x8b   : > { %v511_v46 = vsub.f32 %v477_v18, %v509_v37  ;;  %v519_v47 = vsub.f32 %v505_v19, %v509_v37  ;;  %v971_v48 = vpop.eup %970  ;;  %v427_v49 = vmul.f32 %v969_v43, %v405_v32  ;;  %v485_v51 = vmul.f32 1.442695, %v482_v38 }
  0x8c   : > { %v493_v52 = vmul.f32 1.442695, %v490_v40  ;;  %v512_v53 = vsub.f32 %v478_v23, %v510_v39  ;;  %v973_v42 = vpop.eup %972  ;;  %v428_v54 = vmul.f32 %v971_v48, %v406_v25  ;;  %984 = vpow2.f32 %v483_v44 }
  0x8d   : > { %v513_v50 = vmul.f32 1.442695, %v511_v46  ;;  %v520_v55 = vsub.f32 %v506_v20, %v510_v39  ;;  %v975_v58 = vpop.eup %974  ;;  %v435_v59 = vadd.f32 %v973_v42, %v427_v49  ;;  %986 = vpow2.f32 %v485_v51  ;;  %v843_v20 = vld [vmem:[%s1363_s3 + $0xd8] sm:$0xff]  ;;  %v845_v46 = vld [vmem:[%s1363_s3 + $0xe0] sm:$0xff] }
  0x8e   : > { %v515_v60 = vmul.f32 1.442695, %v512_v53  ;;  %v521_v61 = vmul.f32 1.442695, %v519_v47  ;;  %v436_v0 = vadd.f32 %v975_v58, %v428_v54  ;;  %988 = vpow2.f32 %v491_v45  ;;  %v847_v39 = vld [vmem:[%s1373_s29 + $0xe] ss:$0 sm:$0xff] }
  0x8f   : > { %v977_v63 = vpop.eup %976  ;;  %v523_v1 = vmul.f32 1.442695, %v520_v55  ;;  %v537_v4 = vmax.f32 %v507_v29, %v1427_v24  ;;  %990 = vpow2.f32 %v493_v52  ;;  %v538_v6 = vmax.f32 %v508_v34, %v536_v41  ;;  %v846_v47 = vld [vmem:[%s1363_s3 + $0xe8] sm:$0xff] }
  0x90   : > { %v979_v5 = vpop.eup %978  ;;  %v457_v7 = vmul.f32 %v977_v63, %v435_v59  ;;  %v565_v2 = vadd.f32 %v841_v56, %v839_v57  ;;  %992 = vpow2.f32 %v513_v50  ;;  %v566_v10 = vadd.f32 %v841_v56, %v840_v62  ;;  %v850_v63 = vld [vmem:[%s1373_s29 + $0xf] ss:$0 sm:$0xff] }
  0x91   : > { %v981_v8 = vpop.eup %980  ;;  %v458_v9 = vmul.f32 %v979_v5, %v436_v0  ;;  %v539_v3 = vmax.f32 %v537_v4, -1e+30  ;;  %994 = vpow2.f32 %v515_v60  ;;  %v540_v13 = vmax.f32 %v538_v6, -1e+30  ;;  %v848_v0 = vld [vmem:[%s1363_s3 + $0xf0] sm:$0xff] }
  0x92   : > { %v983_v11 = vpop.eup %982  ;;  %v465_v12 = vadd.f32 %v981_v8, %v457_v7  ;;  %v567_v14 = vmax.f32 %v537_v4, %v565_v2  ;;  %996 = vpow2.f32 %v521_v61  ;;  %v568_v23 = vmax.f32 %v538_v6, %v566_v10 }
  0x93   : > { %v466_v17 = vadd.f32 %v983_v11, %v458_v9  ;;  %v541_v18 = vsub.f32 %v507_v29, %v539_v3  ;;  %v549_v19 = vsub.f32 %v1427_v24, %v539_v3  ;;  %998 = vpow2.f32 %v523_v1 }
  0x94   : > { %v542_v21 = vsub.f32 %v508_v34, %v540_v13  ;;  %v550_v22 = vsub.f32 %v536_v41, %v540_v13  ;;  %v569_v28 = vmax.f32 %v567_v14, -1e+30  ;;  %v595_v30 = vadd.f32 %v844_v15, %v842_v16 }
  0x95   : > { %v543_v26 = vmul.f32 1.442695, %v541_v18  ;;  %v551_v27 = vmul.f32 1.442695, %v549_v19  ;;  %v570_v33 = vmax.f32 %v568_v23, -1e+30  ;;  %v596_v25 = vadd.f32 %v844_v15, %v843_v20 }
  0x96   : > { %v545_v31 = vmul.f32 1.442695, %v542_v21  ;;  %v553_v32 = vmul.f32 1.442695, %v550_v22  ;;  %v985_v35 = vpop.eup %984  ;;  %v571_v29 = vsub.f32 %v537_v4, %v569_v28  ;;  %v579_v24 = vsub.f32 %v565_v2, %v569_v28 }
  0x97   : > { %1000 = vpow2.f32 %v543_v26  ;;  %v597_v36 = vmax.f32 %v567_v14, %v595_v30  ;;  %v987_v37 = vpop.eup %986  ;;  %v487_v34 = vmul.f32 %v985_v35, %v465_v12  ;;  %v572_v38 = vsub.f32 %v538_v6, %v570_v33  ;;  %v849_v6 = vld [vmem:[%s1363_s3 + $0xf8] sm:$0xff] }
  0x98   : > { %1002 = vpow2.f32 %v545_v31  ;;  %v580_v40 = vsub.f32 %v566_v10, %v570_v33  ;;  %v989_v41 = vpop.eup %988  ;;  %v488_v43 = vmul.f32 %v987_v37, %v466_v17  ;;  %v573_v44 = vmul.f32 1.442695, %v571_v29 }
  0x99   : > { %1004 = vpow2.f32 %v551_v27  ;;  %v581_v45 = vmul.f32 1.442695, %v579_v24  ;;  %v991_v48 = vpop.eup %990  ;;  %v495_v49 = vadd.f32 %v989_v41, %v487_v34  ;;  %v575_v51 = vmul.f32 1.442695, %v572_v38 }
  0x9a   : > { %1006 = vpow2.f32 %v553_v32  ;;  %v583_v52 = vmul.f32 1.442695, %v580_v40  ;;  %v993_v53 = vpop.eup %992  ;;  %v496_v42 = vadd.f32 %v991_v48, %v488_v43  ;;  %v598_v54 = vmax.f32 %v568_v23, %v596_v25 }
  0x9b   : > { %1008 = vpow2.f32 %v573_v44  ;;  %v599_v50 = vmax.f32 %v597_v36, -1e+30  ;;  %v995_v55 = vpop.eup %994  ;;  %v517_v56 = vmul.f32 %v993_v53, %v495_v49  ;;  %v625_v57 = vadd.f32 %v847_v39, %v845_v46 }
  0x9c   : > { %1010 = vpow2.f32 %v575_v51  ;;  %v626_v58 = vadd.f32 %v847_v39, %v846_v47  ;;  %v997_v59 = vpop.eup %996  ;;  %v518_v60 = vmul.f32 %v995_v55, %v496_v42  ;;  %v600_v61 = vmax.f32 %v598_v54, -1e+30 }
  0x9d   : > { %1012 = vpow2.f32 %v581_v45  ;;  %v601_v62 = vsub.f32 %v567_v14, %v599_v50  ;;  %v999_v1 = vpop.eup %998  ;;  %v525_v4 = vadd.f32 %v997_v59, %v517_v56  ;;  %v609_v5 = vsub.f32 %v595_v30, %v599_v50 }
  0x9e   : > { %1014 = vpow2.f32 %v583_v52  ;;  %v627_v7 = vmax.f32 %v597_v36, %v625_v57  ;;  %v526_v2 = vadd.f32 %v999_v1, %v518_v60  ;;  %v602_v8 = vsub.f32 %v568_v23, %v600_v61 }
  0x9f   : > { %v603_v9 = vmul.f32 1.442695, %v601_v62  ;;  %v610_v3 = vsub.f32 %v596_v25, %v600_v61  ;;  %v611_v10 = vmul.f32 1.442695, %v609_v5  ;;  %v628_v11 = vmax.f32 %v598_v54, %v626_v58 }
  0xa0   : > { %v629_v12 = vmax.f32 %v627_v7, -1e+30  ;;  %v655_v13 = vadd.f32 %v850_v63, %v848_v0  ;;  %v605_v16 = vmul.f32 1.442695, %v602_v8  ;;  %v656_v17 = vadd.f32 %v850_v63, %v849_v6 }
  0xa1   : > { %v1001_v15 = vpop.eup %1000  ;;  %1016 = vpow2.f32 %v603_v9  ;;  %v613_v14 = vmul.f32 1.442695, %v610_v3  ;;  %v630_v20 = vmax.f32 %v628_v11, -1e+30 }
  0xa2   : > { %v1003_v18 = vpop.eup %1002  ;;  %v547_v19 = vmul.f32 %v1001_v15, %v525_v4  ;;  %1018 = vpow2.f32 %v611_v10  ;;  %v631_v21 = vsub.f32 %v597_v36, %v629_v12  ;;  %v639_v23 = vsub.f32 %v625_v57, %v629_v12 }
  0xa3   : > { %v1005_v22 = vpop.eup %1004  ;;  %v548_v26 = vmul.f32 %v1003_v18, %v526_v2  ;;  %1020 = vpow2.f32 %v605_v16  ;;  %v657_v27 = vmax.f32 %v627_v7, %v655_v13  ;;  %v632_v31 = vsub.f32 %v598_v54, %v630_v20 }
  0xa4   : > { %v1007_v28 = vpop.eup %1006  ;;  %v555_v30 = vadd.f32 %v1005_v22, %v547_v19  ;;  %1022 = vpow2.f32 %v613_v14  ;;  %v633_v32 = vmul.f32 1.442695, %v631_v21  ;;  %v640_v35 = vsub.f32 %v626_v58, %v630_v20 }
  0xa5   : > { %v1009_v33 = vpop.eup %1008  ;;  %v556_v25 = vadd.f32 %v1007_v28, %v548_v26  ;;  %v641_v29 = vmul.f32 1.442695, %v639_v23  ;;  %v658_v24 = vmax.f32 %v628_v11, %v656_v17  ;;  %v635_v38 = vmul.f32 1.442695, %v632_v31 }
  0xa6   : > { %v1011_v37 = vpop.eup %1010  ;;  %v577_v34 = vmul.f32 %v1009_v33, %v555_v30  ;;  %1024 = vpow2.f32 %v633_v32  ;;  %v659_v36 = vmax.f32 %v657_v27, -1e+30  ;;  %v643_v41 = vmul.f32 1.442695, %v640_v35 }
  0xa7   : > { %v1013_v40 = vpop.eup %1012  ;;  %v578_v39 = vmul.f32 %v1011_v37, %v556_v25  ;;  %1026 = vpow2.f32 %v641_v29  ;;  %v660_v43 = vmax.f32 %v658_v24, -1e+30 }
  0xa8   : > { %v1015_v44 = vpop.eup %1014  ;;  %v585_v45 = vadd.f32 %v1013_v40, %v577_v34  ;;  %1028 = vpow2.f32 %v635_v38  ;;  %v661_v46 = vsub.f32 %v627_v7, %v659_v36  ;;  %v669_v47 = vsub.f32 %v655_v13, %v659_v36 }
  0xa9   : > { %1030 = vpow2.f32 %v643_v41  ;;  %v662_v48 = vsub.f32 %v628_v11, %v660_v43  ;;  %v670_v49 = vsub.f32 %v656_v17, %v660_v43  ;;  %v586_v51 = vadd.f32 %v1015_v44, %v578_v39 }
  0xaa   : > { %v663_v52 = vmul.f32 1.442695, %v661_v46  ;;  %v671_v53 = vmul.f32 1.442695, %v669_v47 }
  0xab   : > { %v1017_v42 = vpop.eup %1016  ;;  %v665_v54 = vmul.f32 1.442695, %v662_v48  ;;  %v673_v50 = vmul.f32 1.442695, %v670_v49 }
  0xac   : > { %v1019_v55 = vpop.eup %1018  ;;  %v607_v56 = vmul.f32 %v1017_v42, %v585_v45  ;;  %1032 = vpow2.f32 %v663_v52 }
  0xad   : > { %v1021_v57 = vpop.eup %1020  ;;  %1034 = vpow2.f32 %v665_v54 }
  0xae   : > { %v1023_v58 = vpop.eup %1022  ;;  %v608_v59 = vmul.f32 %v1021_v57, %v586_v51  ;;  %v615_v60 = vadd.f32 %v1019_v55, %v607_v56  ;;  %1036 = vpow2.f32 %v671_v53 }
  0xaf   : > { %1038 = vpow2.f32 %v673_v50 }
  0xb0   : > { %v1025_v61 = vpop.eup %1024  ;;  %v616_v62 = vadd.f32 %v1023_v58, %v608_v59 }
  0xb1   : > { %v1027_v63 = vpop.eup %1026  ;;  %v637_v0 = vmul.f32 %v1025_v61, %v615_v60 }
  0xb2   : > { %v1029_v1 = vpop.eup %1028 }
  0xb3   : > { %v1031_v4 = vpop.eup %1030  ;;  %v638_v5 = vmul.f32 %v1029_v1, %v616_v62  ;;  %v645_v7 = vadd.f32 %v1027_v63, %v637_v0 }
  0xb5   : > { %v646_v6 = vadd.f32 %v1031_v4, %v638_v5 }
  0xb6   : > { %v1033_v2 = vpop.eup %1032 }
  0xb7   : > { %v1035_v8 = vpop.eup %1034  ;;  %v667_v9 = vmul.f32 %v1033_v2, %v645_v7 }
  0xb8   : > { %v1037_v3 = vpop.eup %1036  ;;  %v668_v10 = vmul.f32 %v1035_v8, %v646_v6 }
  0xb9   : > { %v1039_v11 = vpop.eup %1038  ;;  %v675_v12 = vadd.f32 %v1037_v3, %v667_v9 }
  0xba   : > { %v676_v13 = vadd.f32 %v1039_v11, %v668_v10 }
  0xbb   : > { %1040 = vlog2.f32 %v675_v12 }
  0xbc   : > { %1042 = vlog2.f32 %v676_v13 }
  0xc5   : > { %v1041_v15 = vpop.eup %1040 }
  0xc6   : > { %v1043_v16 = vpop.eup %1042  ;;  %v678_v14 = vmul.f32 0.6931472, %v1041_v15 }
  0xc7   : > { %v680_v17 = vmul.f32 0.6931472, %v1043_v16 }
  0xc8   : > { %v681_v18 = vadd.f32 %v678_v14, %v659_v36 }
  0xc9   : > { %v682_v19 = vadd.f32 %v680_v17, %v660_v43 }
  0xca   : > { %683 = vst [vmem:[%s199_s5] sm:$0xff] %v681_v18 }
  0xcb   : > { %684 = vst [vmem:[%s199_s5 + $0x8] sm:$0xff] %v682_v19 }
  0xcc   : > { %1117 = shalt.err (!%p1114_p11)
}
  0xcd   : > { %s1118_s17 = scalar_lea.hbm %s1451_s28, 256  ;;  %s1122_s25 = scalar_lea.hbm %s1499_s2, 512 }
  0xce   : > { %p1119_p0 = scmp.ne.s32.totalorder %s1451_s28, %s1118_s17  ;;  %p1123_p3 = scmp.lt.u32.totalorder %s1451_s28, %s1499_s2 }
  0xcf   : > { %p1124_p5 = scmp.lt.u32.totalorder %s1122_s25, %s1118_s17  ;;  %p1126_p13 = scmp.lt.u32.totalorder %s1118_s17, %s1451_s28 }
  0xd0   : > { %p1120_p4 = pnand %p1119_p0, %p1510_p2 }
  0xd1   : > { %p1125_p6 = por %p1124_p5, %p1123_p3 }
  0xd2   : > { %p1121_p1 = pneg %p1120_p4 }
  0xd3   : > { %p1127_p12 = por %p1126_p13, %p1125_p6 }
  0xd5   : > { %p1128_p10 = pnand %p1127_p12, %p1121_p1 }
  0xd7   : > { %1131 = shalt.err (!%p1128_p10)
}
  0xd8   : > { %s1182_s27 = smov 128   ;;  %s1183_s29 = smov 256  }
  0xd9   : > { %s1184_s20 = smov 8  }
  0xda   : > { %859 = dma.vmem_to_hbm [thread:$0]  (%p1510_p2), %s1453_s14, 256, %s1451_s28, %s686_s13, %s1182_s27, %s1183_s29, %s1184_s20  }
  0xdb PF: > { %s713_s5 = sand.u32 1, %s1162_s9   ;;  %p1511_p7 = scmp.ne.s32.totalorder %s1505_s22, 0 }
  0xdc   : > { %p1512_p8 = scmp.ge.s32.totalorder %s1174_s12, 2  ;;  %s714_s16 = scalar_lea.sflag [#allocation4], %s713_s5 }
  0xde   : > { %p869_p9 = pnand %p1512_p8, %p1511_p7 }
  0xe0   : > { %1157 = dma.done.wait (!%p869_p9), %s714_s16, 256  }
  0xe1   : > { %1159 = vsyncadd (!%p869_p9), %s714_s16, 4294967040  ;;  %p18_p11 = scmp.ge.s32.totalorder %s1225_s15, 4   ;;  %s1513_s9 = smov %s1166_s10 }
  0xe2   : > { %s1514_s10 = smov %s1170_s11  ;;  %s1515_s11 = smov %s1237_s18 }
  0xe3   : > { %s1516_s12 = smov %s1225_s15  ;;  %20 = sbr.rel (!%p18_p11) target bundleno = 7 (0x7), region = 101 }
  0xea   :  { %719 = vsyncpa [#allocation3], 1 }
  0xeb   :  { %721 = vsyncpa [#allocation3 + $0x1], 1 }
  0xec   :  { %722 = vsyncpa [#allocation6], 1 }
  0xed   :  { %724 = vsyncpa [#allocation6 + $0x1], 1 }
  0xee   :  { %725 = vsyncpa [#allocation4], 1 }
  0xef   :  { %727 = vsyncpa [#allocation4 + $0x1], 1 }

</bundles_post_ra>
